<compile_context>
chip_gen: v7x
topology: tpu7x:2x2x1
jax: 0.10.0
libtpu: 0.0.40
codegen_flags: <defaults>
</compile_context>

<pallas_src>
import math

import jax
import jax.numpy as jnp
from jax.experimental import pallas as pl
from jax.experimental.pallas import tpu as pltpu


_REPS_CAP = 32              # max unrolled chunk-stores in the row-tiling kernel
_MIN_KERNEL_BYTES = 2 << 20  # below this, XLA's native broadcast wins


# ----------------------------- kernel bodies -------------------------------

def _bcast_slots_kernel(p_ref, o_ref):
    # p_ref: (S, P1); o_ref: (T, S, P1) -- replicate the slot over a new axis.
    o_ref[...] = jnp.broadcast_to(p_ref[...][None, :, :], o_ref.shape)


def _bcast_rows_kernel(p_ref, o_ref):
    # p_ref: (1, P1); o_ref: (TR, P1) -- sublane broadcast of a single row.
    o_ref[...] = jnp.broadcast_to(p_ref[...], o_ref.shape)


def _tile_rows_kernel(p_ref, o_ref):
    # p_ref: (PRb, P1) pack-aligned pre-tiled chunk; o_ref: (TR, P1).
    # Short static loop of full-width, pack-aligned stores (no reshape/tile).
    prb = p_ref.shape[0]
    tr = o_ref.shape[0]
    t = 0
    while t < tr:
        n = min(prb, tr - t)
        o_ref[t:t + n, :] = p_ref[0:n, :]
        t += n


# ------------------------------- wrapper ------------------------------------

def parameter_module_forward(x: jax.Array, parameter: jax.Array,
                             in_shape: tuple, *,
                             materialize: bool = True,
                             target_block_bytes: int | None = None,
                             min_kernel_bytes: int = _MIN_KERNEL_BYTES) -> jax.Array:
    """Broadcast `parameter` (shape = out_shape) over the batch dims of `x`."""
    in_shape = tuple(in_shape)
    batch_shape = x.shape[: x.ndim - len(in_shape)]
    out_shape = parameter.shape
    full_shape = batch_shape + out_shape

    if not materialize:
        # Zero-cost path: let XLA fuse the broadcast into downstream consumers.
        return jnp.broadcast_to(parameter, full_shape)

    b = 1
    for d in batch_shape:
        b *= int(d)
    psize = int(parameter.size)
    itemsize = jnp.dtype(parameter.dtype).itemsize
    out_bytes = b * psize * itemsize

    # Degenerate or tiny outputs: kernel launch + pipeline overhead not worth it.
    if b == 0 or psize == 0 or out_bytes < min_kernel_bytes:
        return jnp.broadcast_to(parameter, full_shape)

    # ---- hardware VMEM budget (v7x = 64 MiB physical, v5e/v6e = 128 MiB) ----
    try:
        vmem_cap = int(pltpu.get_tpu_info().vmem_capacity_bytes)
        if vmem_cap <= 0:
            raise ValueError
    except Exception:  # conservative fallback valid on every generation
        vmem_cap = 64 << 20
    if target_block_bytes is None:
        target_block_bytes = (16 << 20) if vmem_cap >= (96 << 20) else (6 << 20)
    # 2x double-buffered output blocks + 2x param blocks + margin must fit VMEM.
    cap_budget = max(256 << 10, (vmem_cap * 3 // 4 - (4 << 20)) // 4)
    budget = max(4 << 10, min(int(target_block_bytes), cap_budget))

    # Sublane pack: 8 rows f32, 16 bf16, 32 int8/fp8.
    pack = max(8, 8 * (4 // max(1, itemsize)))

    # ---- lane-dense 2D factorization of the flattened parameter ------------
    last = out_shape[-1] if parameter.ndim >= 1 else 1
    if last > 0 and last % 128 == 0:
        P1 = int(last)
    elif psize % 128 == 0:
        P1 = 128
        while P1 * 2 <= min(psize, 2048) and psize % (P1 * 2) == 0:
            P1 *= 2
    else:
        P1 = psize                      # narrow fallback (masked lanes)
    P0 = psize // P1
    param2d = parameter.reshape(P0, P1)

    row_bytes = ((P1 + 127) // 128) * 128 * itemsize
    budget_rows = max(1, budget // row_bytes)

    def _pad_rows(r):
        return ((r + pack - 1) // pack) * pack

    slot_aligned = (P0 % pack == 0) or (P0 >= 8 * pack)

    if slot_aligned:
        slot_bytes = _pad_rows(P0) * row_bytes
        want_split_slot = (b == 1 and P0 // 2 >= pack)  # feed both v7x TCs
        if slot_bytes <= budget and not want_split_slot:
            # ---- Path A1: TB whole parameter slots per output block --------
            TB = max(1, min(b, budget // slot_bytes))
            if pl.cdiv(b, TB) == 1 and b > 1:
                TB = pl.cdiv(b, 2)            # >= 2 grid steps for megacore
            grid = (pl.cdiv(b, TB),)
            out_arr = jax.ShapeDtypeStruct((b, P0, P1), parameter.dtype)
            in_specs = [pl.BlockSpec((P0, P1), lambda i: (0, 0))]
            out_specs = pl.BlockSpec((TB, P0, P1), lambda i: (i, 0, 0))
            kernel = _bcast_slots_kernel
            operand = param2d
            semantics = ("parallel",)
            blk_bytes = TB * slot_bytes
            pblk_bytes = slot_bytes
            pread_bytes = psize * itemsize
        else:
            # ---- Path A2: large slot -> tile rows within the slot ----------
            rows_cap = budget_rows
            if want_split_slot:
                rows_cap = min(rows_cap, P0 // 2)
            rows_cap = max(1, rows_cap)
            best, best_pk = 1, 0
            d = 1
            while d * d <= P0:
                if P0 % d == 0:
                    for c in (d, P0 // d):
                        if c <= rows_cap:
                            if c > best:
                                best = c
                            if c % pack == 0 and c > best_pk:
                                best_pk = c
                d += 1
            TP0 = best_pk if best_pk > 0 else P0   # fall back to full slot
            nj = P0 // TP0
            # Outer axis = row-block of the slot; inner axis = batch slot, so
            # the param block index is constant across the fast axis (one DMA).
            grid = (nj, b)
            out_arr = jax.ShapeDtypeStruct((b, P0, P1), parameter.dtype)
            in_specs = [pl.BlockSpec((TP0, P1), lambda j, i: (j, 0))]
            out_specs = pl.BlockSpec((1, TP0, P1), lambda j, i: (i, j, 0))
            kernel = _bcast_slots_kernel
            operand = param2d
            semantics = ("parallel", "parallel")
            blk_bytes = _pad_rows(TP0) * row_bytes
            pblk_bytes = blk_bytes
            pread_bytes = psize * itemsize
    else:
        # ---- Path B: small / sublane-unaligned slot -> fold batch into rows
        total_rows = b * P0
        out_arr = jax.ShapeDtypeStruct((total_rows, P1), parameter.dtype)
        semantics = ("parallel",)
        if P0 == 1:
            TR = min(total_rows, max(1, budget_rows))
            if TR < total_rows:
                TR = max(pack, (TR // pack) * pack)
                TR = min(TR, total_rows)
            if pl.cdiv(total_rows, TR) == 1 and total_rows > pack:
                half = ((pl.cdiv(total_rows, 2) + pack - 1) // pack) * pack
                if half < total_rows:
                    TR = half              # split so both TCs get work
            grid = (pl.cdiv(total_rows, TR),)
            in_specs = [pl.BlockSpec((1, P1), lambda i: (0, 0))]
            out_specs = pl.BlockSpec((TR, P1), lambda i: (i, 0))
            kernel = _bcast_rows_kernel
            operand = param2d
            blk_bytes = _pad_rows(TR) * row_bytes
            pblk_bytes = _pad_rows(1) * row_bytes
            pread_bytes = psize * itemsize
        else:
            PR0 = P0 * (pack // math.gcd(P0, pack))        # lcm(P0, pack)
            units = pl.cdiv(total_rows, PR0)
            TU = max(1, min(units, budget_rows // PR0))
            if pl.cdiv(units, TU) == 1 and units > 1:
                TU = pl.cdiv(units, 2)                     # >= 2 grid steps
            TR = min(TU * PR0, total_rows)
            grid = (pl.cdiv(total_rows, TR),)
            # One-time tiny pre-tile so the in-kernel replication is a short
            # unrolled loop of pack-aligned, full-width stores.
            k_units = max(1, -(-TU // _REPS_CAP))          # ceil(TU / cap)
            PRb = min(k_units * PR0, max(PR0, TR))
            param_big = jnp.tile(param2d, (PRb // P0, 1))
            in_specs = [pl.BlockSpec((PRb, P1), lambda i: (0, 0))]
            out_specs = pl.BlockSpec((TR, P1), lambda i: (i, 0))
            kernel = _tile_rows_kernel
            operand = param_big
            blk_bytes = _pad_rows(TR) * row_bytes
            pblk_bytes = _pad_rows(PRb) * row_bytes
            pread_bytes = PRb * P1 * itemsize

    # ---- VMEM sizing / safety valve ----------------------------------------
    est_vmem = 2 * blk_bytes + 2 * pblk_bytes + (4 << 20)
    if est_vmem > vmem_cap:
        # Pathological shape for which no safe tiling was found: let XLA do it.
        return jnp.broadcast_to(parameter, full_shape)
    vmem_limit = int(min(vmem_cap, max(est_vmem, 16 << 20)))

    cost = pl.CostEstimate(flops=0, transcendentals=0,
                           bytes_accessed=out_bytes + pread_bytes)

    out_flat = pl.pallas_call(
        kernel,
        out_shape=out_arr,
        grid_spec=pltpu.PrefetchScalarGridSpec(
            num_scalar_prefetch=0,
            grid=grid,
            in_specs=in_specs,
            out_specs=out_specs,
        ),
        compiler_params=pltpu.CompilerParams(
            dimension_semantics=semantics,
            vmem_limit_bytes=vmem_limit),
        cost_estimate=cost,
    )(operand)

    return out_flat.reshape(full_shape)


# --------------------------------- tests ------------------------------------

if __name__ == "__main__":
    key = jax.random.PRNGKey(0)
    k = jax.random.split(key, 8)

    def check(name, xa, param, in_shape, **kw):
        out = parameter_module_forward(xa, param, in_shape,
                                       min_kernel_bytes=0, **kw)
        out = jax.block_until_ready(out)
        batch_shape = xa.shape[: xa.ndim - len(in_shape)]
        expected = jnp.broadcast_to(param, batch_shape + param.shape)
        assert out.shape == expected.shape, (name, out.shape, expected.shape)
        assert out.dtype == param.dtype, (name, out.dtype)
        assert bool(jnp.allclose(out, expected)), f"broadcast mismatch ({name})"

    # 1) aligned slot (8,128), batch (2,3): Path A1, grid forced to 2 steps.
    x1 = jax.random.normal(k[0], (2, 3, 8, 32), dtype=jnp.float32)
    p1 = jax.random.normal(k[1], (8, 128), dtype=jnp.float32)
    check("aligned-slot", x1, p1, (8, 32))

    # 2) narrow param (4,32) -> one 128-lane row: dense 2D fold + sublane
    #    broadcast; tiny block -> 2-step grid with masked partial last block.
    x2 = jax.random.normal(k[2], (20, 3), dtype=jnp.float32)
    p2 = jax.random.normal(k[3], (4, 32), dtype=jnp.float32)
    check("row-broadcast", x2, p2, (3,), target_block_bytes=16 * 1024)

    # 3) sublane-unaligned slot (4,256): 2D fold + pre-tiled row tiling, with a
    #    partial tail block.
    x3 = jax.random.normal(k[4], (10, 5), dtype=jnp.float32)
    p3 = jax.random.normal(k[5], (4, 256), dtype=jnp.float32)
    check("row-tiling", x3, p3, (5,), target_block_bytes=32 * 1024)

    # 4) large aligned slot (512,256) with a small budget: within-slot tiling
    #    on a second grid axis (Path A2).
    x4 = jax.random.normal(k[6], (2, 16), dtype=jnp.float32)
    p4 = jax.random.normal(k[7], (512, 256), dtype=jnp.float32)
    check("slot-tiling", x4, p4, (16,), target_block_bytes=128 * 1024)

    print("KERNEL_OK")
</pallas_src>

<mosaic_0001>
module attributes {stable_mosaic.version = 11 : i64} {
  func.func @_bcast_slots_kernel(%arg0: i32, %arg1: memref<8x128xf32, #tpu.memory_space<vmem>>, %arg2: memref<3x8x128xf32, #tpu.memory_space<vmem>>) attributes {dimension_semantics = [#tpu.dimension_semantics<parallel>], iteration_bounds = array<i64: 2>, scalar_prefetch = 0 : i64, scratch_operands = 0 : i64, tpu.core_type = #tpu.core_type<tc>, window_params = [{pipeline_mode = #tpu.pipeline_mode<synchronous>, transform_indices = @transform_0, window_bounds = array<i64: 8, 128>}, {transform_indices = @transform_1, window_bounds = array<i64: 3, 8, 128>}]} {
    %c0 = arith.constant 0 : index
    %c0_0 = arith.constant 0 : index
    %0 = vector.load %arg1[%c0, %c0_0] : memref<8x128xf32, #tpu.memory_space<vmem>>, vector<8x128xf32>
    %1 = vector.shape_cast %0 : vector<8x128xf32> to vector<1x8x128xf32>
    %2 = vector.shape_cast %1 : vector<1x8x128xf32> to vector<1x8x128xf32>
    %3 = vector.broadcast %2 : vector<1x8x128xf32> to vector<3x8x128xf32>
    %c0_1 = arith.constant 0 : index
    %c0_2 = arith.constant 0 : index
    %c0_3 = arith.constant 0 : index
    %4 = vector.load %arg2[%c0_1, %c0_2, %c0_3] : memref<3x8x128xf32, #tpu.memory_space<vmem>>, vector<3x8x128xf32>
    tpu.vector_store %arg2[%c0_1, %c0_2, %c0_3], %3 {strides = array<i32>} : memref<3x8x128xf32, #tpu.memory_space<vmem>>, vector<3x8x128xf32>,
    return
  }
  func.func @transform_0(%arg0: i32) -> (i32, i32) {
    %c0_i32 = arith.constant 0 : i32
    %c0_i32_0 = arith.constant 0 : i32
    %c0_i32_1 = arith.constant 0 : i32
    return %c0_i32, %c0_i32_0 : i32, i32
  }
  func.func @transform_1(%arg0: i32) -> (i32, i32, i32) {
    %c0_i32 = arith.constant 0 : i32
    %c0_i32_0 = arith.constant 0 : i32
    %c0_i32_1 = arith.constant 0 : i32
    return %arg0, %c0_i32, %c0_i32_0 : i32, i32, i32
  }
}

</mosaic_0001>

<bundles_post_ra>
// kernel: tpu_custom_call.1
= control target key start
LH: loop header
LB: loop body
LE: loop exit
PB: predicated region body
PF: predicated region fallthrough
CT: control target
= control target key end

     0   :  { %6 = vsyncpa [#allocation3], 0  ;;  %s494_s0 = inlined_call_operand.hbm [shape: f32[8,128], index: 0, kind: input, shape index: {}]   ;;  %s495_s1 = inlined_call_operand.hbm [shape: f32[6,8,128], index: 1, kind: output, shape index: {}]  }
   0x1   :  { %7 = vsyncpa [#allocation4], 0 }
   0x2   :  { %9 = vsyncpa [#allocation4 + $0x1], 0  ;;  %s361_s6 = smov 0   ;;  %s363_s7 = smov 0  }
   0x3   :  { %s365_s8 = smov 0   ;;  %s367_s9 = smov 0  }
   0x4 LB: > { %s382_s10 = sadd.s32 4294967295, %s345_s9   ;;  %s189_s11 = sadd.s32 4294967294, %s345_s9   ;;  %s345_s9 = sphi %s367_s9, %s511_s9   ;;  %s341_s8 = sphi %s365_s8, %s510_s8   ;;  %s337_s7 = sphi %s363_s7, %s509_s7   ;;  %s333_s6 = sphi %s361_s6, %s508_s6  }
   0x5   : > { %s386_s12 = sadd.s32 1, %s345_s9   ;;  %s43_s13 = sadd.s32 1, %s341_s8 }
   0x6   : > { %s40_s14 = ssub.s32 %s345_s9, %s386_s12  ;;  %p53_p0 = scmp.ne.s32.totalorder %s341_s8, %s337_s7 }
   0x7   : > { %p41_p1 = scmp.eq.s32.totalorder %s40_s14, 0  ;;  %p54_p2 = scmp.eq.s32.totalorder %s382_s10, 1 }
   0x8   : > { %p59_p3 = scmp.ne.s32.totalorder %s337_s7, %s333_s6  ;;  %p60_p4 = scmp.eq.s32.totalorder %s189_s11, 1 }
   0x9   : > { %s397_s15 = scalar_select %p41_p1, %s341_s8, %s43_s13  }
   0xa   : > { %p399_p5 = por %p54_p2, %p53_p0  ;;  %p403_p6 = por %p60_p4, %p59_p3 }
   0xb   : > { %p190_p7 = scmp.ge.s32.totalorder %s345_s9, 1  ;;  %p67_p8 = scmp.lt.s32.totalorder %s345_s9, 3 }
   0xc   : > { %s499_s16 = scalar_select %p399_p5, 1, 0 }
   0xd   : > { %s500_s17 = scalar_select %p403_p6, 1, 0 }
   0xe   : > { %p496_p9 = scmp.eq.s32.totalorder %s382_s10, 0  ;;  %p410_p10 = pnand %p190_p7, %p67_p8 }
   0xf   : > { %s347_s19 = smov [#allocation2]   ;;  %s251_s24 = scalar_lea.hbm %s494_s0, 128 }
  0x10   : > { %s501_s18 = scalar_select %p410_p10, 1, 0 }
  0x11   : > { %s80_s20 = sshll.u32 %s347_s19, 4  ;;  %p205_p11 = pneg %p410_p10  ;;  %s81_s20 = int_to_ptr.vmem [resolvable:$true] %s80_s20 }
  0x12   : > { %p252_p13 = scmp.ne.s32.totalorder %s494_s0, %s251_s24  ;;  %p258_p3 = scmp.lt.u32.totalorder %s251_s24, %s494_s0 }
  0x13   : > { %p418_p12 = pnand %p496_p9, %p205_p11 }
  0x15   : > { %p253_p0 = pneg %p418_p12 }
  0x17   : > { %p254_p1 = pnand %p253_p0, %p252_p13 }
  0x19   : > { %p255_p2 = pneg %p254_p1 }
  0x1b   : > { %p260_p4 = pnand %p258_p3, %p255_p2 }
  0x1d   : > { %263 = shalt.err (!%p260_p4)
}
  0x1e   : > { %s264_s29 = scalar_lea.vmem %s81_s20, 128  ;;  %p272_p9 = scmp.lt.s32.totalorder %s81_s20, %s81_s20 }
  0x1f   : > { %p265_p7 = scmp.ne.s32.totalorder %s81_s20, %s264_s29  ;;  %p273_p6 = scmp.lt.s32.totalorder %s264_s29, %s264_s29 }
  0x21   : > { %p267_p8 = pnand %p265_p7, %p253_p0  ;;  %p274_p5 = por %p273_p6, %p272_p9 }
  0x23   : > { %p268_p11 = pneg %p267_p8 }
  0x25   : > { %p275_p10 = pnand %p274_p5, %p268_p11 }
  0x27   : > { %278 = shalt.err (!%p275_p10)
}
  0x28   : > { %208 = dma.hbm_to_vmem [thread:$0]  (!%p418_p12), %s494_s0, 128, %s81_s20, [#allocation3]  }
  0x29   : > { %p503_p13 = scmp.ne.s32.totalorder %s501_s18, 0 }
  0x2a   : > { %p504_p1 = scmp.eq.s32.totalorder (!%p503_p13), %s382_s10, 0 }
  0x2b   : > { %93 = sbr.rel (%p503_p13) target bundleno = 79 (0x4f), region = 24 }
  0x32   : > { %324 = dma.done.wait (%p504_p1), [#allocation3], 128   ;;  %p505_p0 = pmov %p504_p1 }
  0x33   : > { %s105_s3 = sand.u32 1, %s337_s7   ;;  %s197_s4 = smul.u32 384, %s382_s10  ;;  %v109_v0 = vld [vmem:[#allocation2] sm:$0xff] }
  0x34   : > { %326 = vsyncadd (%p505_p0), [#allocation3], 4294967168  ;;  %s198_s5 = smul.u32 24, %s105_s3  ;;  %s453_s18 = scalar_lea.sflag [#allocation4], %s105_s3 }
  0x35   : > { %s449_s20 = scalar_lea.hbm %s495_s1, %s197_s4  ;;  %p506_p6 = scmp.ne.s32.totalorder %s499_s16, 0 }
  0x36   : > { %s107_s11 = scalar_lea.vmem [#allocation5], %s198_s5  ;;  %s348_s21 = smov [#allocation5]  }
  0x37   : > { %s127_s13 = sshll.u32 %s107_s11, 4  ;;  %110 = vst [vmem:[%s107_s11] sm:$0xff] %v109_v0  ;;  %111 = vst [vmem:[%s107_s11 + $0x8] sm:$0xff] %v109_v0  ;;  %s283_s22 = sshll.u32 %s348_s21, 4  ;;  %s451_s13 = int_to_ptr.vmem [resolvable:$true] %s127_s13  ;;  %s284_s22 = int_to_ptr.vmem [resolvable:$false] %s283_s22 }
  0x38   : > { %112 = vst [vmem:[%s107_s11 + $0x10] sm:$0xff] %v109_v0  ;;  %s279_s10 = scalar_lea.vmem %s451_s13, 384  ;;  %s285_s23 = scalar_lea.vmem %s284_s22, 768 }
  0x39   : > { %p280_p5 = scmp.ne.s32.totalorder %s451_s13, %s279_s10  ;;  %p286_p12 = scmp.lt.s32.totalorder %s451_s13, %s284_s22 }
  0x3a   : > { %p287_p2 = scmp.lt.s32.totalorder %s285_s23, %s279_s10 }
  0x3b   : > { %p281_p9 = pnand %p280_p5, %p506_p6 }
  0x3c   : > { %p288_p3 = por %p287_p2, %p286_p12 }
  0x3d   : > { %p282_p10 = pneg %p281_p9 }
  0x3f   : > { %p289_p4 = pnand %p288_p3, %p282_p10 }
  0x41   : > { %292 = shalt.err (!%p289_p4)
}
  0x42   : > { %s293_s24 = scalar_lea.hbm %s449_s20, 384  ;;  %s297_s27 = scalar_lea.hbm %s495_s1, 768 }
  0x43   : > { %p294_p7 = scmp.ne.s32.totalorder %s449_s20, %s293_s24  ;;  %p298_p13 = scmp.lt.u32.totalorder %s449_s20, %s495_s1 }
  0x44   : > { %p299_p1 = scmp.lt.u32.totalorder %s297_s27, %s293_s24  ;;  %p301_p5 = scmp.lt.u32.totalorder %s293_s24, %s449_s20 }
  0x45   : > { %p295_p8 = pnand %p294_p7, %p506_p6 }
  0x46   : > { %p300_p0 = por %p299_p1, %p298_p13 }
  0x47   : > { %p296_p11 = pneg %p295_p8 }
  0x48   : > { %p302_p9 = por %p301_p5, %p300_p0 }
  0x4a   : > { %p303_p10 = pnand %p302_p9, %p296_p11 }
  0x4c   : > { %306 = shalt.err (!%p303_p10)
}
  0x4d   : > { %s349_s30 = smov 128   ;;  %s350_s2 = smov 8  }
  0x4e   : > { %203 = dma.vmem_to_hbm [thread:$0]  (%p506_p6), %s451_s13, 384, %s449_s20, %s453_s18, %s349_s30, %s349_s30, %s350_s2  }
  0x4f PF: > { %p215_p12 = scmp.ge.s32.totalorder %s345_s9, 2  ;;  %s142_s3 = sand.u32 1, %s333_s6  }
  0x50   : > { %p507_p2 = scmp.ne.s32.totalorder %s500_s17, 0  ;;  %s143_s4 = scalar_lea.sflag [#allocation4], %s142_s3 }
  0x52   : > { %p210_p3 = pnand %p215_p12, %p507_p2 }
  0x54   : > { %328 = dma.done.wait (!%p210_p3), %s143_s4, 384  }
  0x55   : > { %330 = vsyncadd (!%p210_p3), %s143_s4, 4294966912  ;;  %p12_p4 = scmp.ge.s32.totalorder %s386_s12, 4   ;;  %s508_s6 = smov %s337_s7 }
  0x56   : > { %s509_s7 = smov %s341_s8  ;;  %s510_s8 = smov %s397_s15 }
  0x57   : > { %s511_s9 = smov %s386_s12  ;;  %14 = sbr.rel (!%p12_p4) target bundleno = 4 (0x4), region = 61 }
  0x5e   :  { %148 = vsyncpa [#allocation3], 1 }
  0x5f   :  { %150 = vsyncpa [#allocation3 + $0x1], 1 }
  0x60   :  { %151 = vsyncpa [#allocation4], 1 }
  0x61   :  { %153 = vsyncpa [#allocation4 + $0x1], 1 }

</bundles_post_ra>
